<compile_context>
chip_gen: v7x
topology: tpu7x:2x2x1
jax: 0.10.0
libtpu: 0.0.40
codegen_flags: <defaults>
</compile_context>

<pallas_src>
import functools
import math

import jax
import jax.numpy as jnp
from jax.experimental import pallas as pl
from jax.experimental.pallas import tpu as pltpu


def _posenc_kernel(*refs, apply_dropout, keep_thresh, scale):
    if apply_dropout:
        x_ref, pe_ref, bits_ref, o_ref = refs
    else:
        x_ref, pe_ref, o_ref = refs

    # Native-dtype broadcasted add: (bb, bs, D) + (1, bs, D)
    y = x_ref[...] + pe_ref[...][None, :, :]

    if apply_dropout:
        # Inverted dropout: keep iff low-24 random bits >= round(p * 2^24).
        keep = (bits_ref[...] & jnp.uint32(0x00FFFFFF)) >= jnp.uint32(keep_thresh)
        y = jnp.where(keep, y * jnp.asarray(scale, y.dtype), jnp.zeros((), y.dtype))

    o_ref[...] = y.astype(o_ref.dtype)


def make_positional_encoding_table(d_model, seq_len, dtype=jnp.float32):
    """Same table as the PyTorch module's `pe` buffer (shape (seq_len, d_model))."""
    position = jnp.arange(seq_len, dtype=jnp.float32)[:, None]              # (S, 1)
    div_term = jnp.exp(
        jnp.arange(0, d_model, 2, dtype=jnp.float32) * (-math.log(10000.0) / d_model)
    )                                                                        # (ceil(D/2),)
    ang = position * div_term                                                # (S, ceil(D/2))
    pe = jnp.zeros((seq_len, d_model), jnp.float32)
    pe = pe.at[:, 0::2].set(jnp.sin(ang))
    pe = pe.at[:, 1::2].set(jnp.cos(ang)[:, : d_model // 2])
    return pe.astype(dtype)


def _fold_factor(seq, d_model):
    # Smallest k with (k * d_model) % 128 == 0; fold only if it divides seq.
    if d_model % 128 == 0 or seq <= 0:
        return 1
    k = 128 // math.gcd(d_model, 128)
    if k > 1 and seq % k == 0:
        return k
    return 1


def _pick_blocks(batch, seq, d_model, itemsize, training):
    # dtype-aware sublane multiple: 8 for f32, 16 for bf16, 32 for int8/fp8.
    sub = max(8, 32 // max(itemsize, 1))
    # Bytes per (batch, seq) row across pipelined streams (x in, out, pe upper
    # bound, [bits]); budget so double-buffered tiles stay ~<= 40 MiB, i.e.
    # safe on v7x's 64 MiB physical VMEM while giving ~5-10 MiB tiles that
    # amortize the ~0.35us per-grid-step overhead on all generations.
    row_bytes = d_model * (3 * itemsize + (4 if training else 0))
    target_rows = max(sub, (40 << 20) // (2 * max(row_bytes, 1)))
    if seq <= target_rows:
        block_seq = seq                                    # full dim -> always legal
        block_batch = max(1, min(batch, target_rows // max(seq, 1)))
    else:
        block_seq = max(sub, (target_rows // sub) * sub)   # sublane multiple
        block_batch = 1
    return block_batch, block_seq


def positional_encoding(x, pe, *, dropout_p=0.0, training=False, rng=None,
                        block_batch=None, block_seq=None):
    """x: (batch, seq, d_model); pe: (max_seq_len, d_model). Matches module forward."""
    batch, seq, d_model = x.shape
    assert pe.shape[0] >= seq and pe.shape[1] == d_model
    pe_s = pe[:seq].astype(x.dtype)                        # self.pe[:, :x.shape[1], :]

    apply_dropout = bool(training) and float(dropout_p) > 0.0
    if apply_dropout:
        assert rng is not None, "training-mode dropout needs an rng key"
        bits = jax.random.bits(rng, x.shape, dtype=jnp.uint32)

    # Lane-density plumbing: fold k adjacent positions into the lane axis so
    # the output's last dim is a multiple of 128 (avoids masked vst.msk stores).
    k = _fold_factor(seq, d_model)
    seq_f, d_f = seq // k, k * d_model
    x_f = x.reshape(batch, seq_f, d_f)
    pe_f = pe_s.reshape(seq_f, d_f)
    bits_f = bits.reshape(batch, seq_f, d_f) if apply_dropout else None

    itemsize = jnp.dtype(x.dtype).itemsize
    if block_batch is None or block_seq is None:
        bb, bs = _pick_blocks(batch, seq_f, d_f, itemsize, apply_dropout)
        block_batch = block_batch or bb
        block_seq = block_seq or bs

    # Grid: seq outer, batch INNERMOST -> consecutive steps hit the same pe
    # block index and Pallas elides the pe re-copy (pe read once per seq block).
    # cdiv grid: ragged last blocks get padded reads / discarded OOB writes.
    grid = (pl.cdiv(seq_f, block_seq), pl.cdiv(batch, block_batch))

    kernel = functools.partial(
        _posenc_kernel,
        apply_dropout=apply_dropout,
        keep_thresh=int(round(float(dropout_p) * (1 << 24))),
        scale=(float(1.0 / (1.0 - float(dropout_p))) if apply_dropout else 1.0),
    )

    x_spec = pl.BlockSpec((block_batch, block_seq, d_f), lambda s, b: (b, s, 0))
    pe_spec = pl.BlockSpec((block_seq, d_f), lambda s, b: (s, 0))
    in_specs = [x_spec, pe_spec]
    operands = [x_f, pe_f]
    if apply_dropout:
        in_specs.append(pl.BlockSpec((block_batch, block_seq, d_f), lambda s, b: (b, s, 0)))
        operands.append(bits_f)

    # Explicit VMEM budget: double-buffered in/out/bits tiles + pe tiles +
    # headroom, clamped so it also fits v7x's 64 MiB physical VMEM.
    x_tile = block_batch * block_seq * d_f * itemsize
    bits_tile = block_batch * block_seq * d_f * 4 if apply_dropout else 0
    pe_tile = block_seq * d_f * itemsize
    vmem_limit = int(min(max(2 * (2 * x_tile + bits_tile + pe_tile) + (2 << 20),
                             16 << 20), 48 << 20))

    out_f = pl.pallas_call(
        kernel,
        out_shape=jax.ShapeDtypeStruct((batch, seq_f, d_f), x.dtype),
        grid_spec=pltpu.PrefetchScalarGridSpec(
            num_scalar_prefetch=0,
            grid=grid,
            in_specs=in_specs,
            out_specs=pl.BlockSpec((block_batch, block_seq, d_f), lambda s, b: (b, s, 0)),
        ),
        compiler_params=pltpu.CompilerParams(
            # Both grid axes are fully independent -> shardable across v7x's 2 TCs;
            # sharding the outer (seq) axis preserves pe reuse within each TC.
            dimension_semantics=("parallel", "parallel"),
            vmem_limit_bytes=vmem_limit,
        ),
    )(*operands)
    return out_f.reshape(batch, seq, d_model)


if __name__ == "__main__":
    key = jax.random.PRNGKey(0)
    batch, seq, d_model, max_seq_len = 2, 8, 32, 16
    dropout_p = 0.1

    kx, kd = jax.random.split(key)
    x = jax.random.normal(kx, (batch, seq, d_model), dtype=jnp.float32)
    pe = make_positional_encoding_table(d_model, max_seq_len)
    ref = x + pe[None, :seq, :]

    # Eval path (dropout is identity): exact numeric check.
    out_eval = jax.block_until_ready(
        positional_encoding(x, pe, dropout_p=dropout_p, training=False)
    )
    assert jnp.allclose(out_eval, ref, atol=1e-6, rtol=1e-6), "eval-mode mismatch"

    # Training path: the dropout mask is reproducible on the host from the same
    # key, so the check is exact (no "==0 means dropped" heuristic).
    out_train = jax.block_until_ready(
        positional_encoding(x, pe, dropout_p=dropout_p, training=True, rng=kd)
    )
    bits = jax.random.bits(kd, x.shape, dtype=jnp.uint32)
    keep = (bits & jnp.uint32(0x00FFFFFF)) >= jnp.uint32(round(dropout_p * (1 << 24)))
    expected = jnp.where(keep, ref * (1.0 / (1.0 - dropout_p)), 0.0)
    assert jnp.allclose(out_train, expected, atol=1e-6, rtol=1e-6), "train-mode mismatch"
    assert bool(jnp.isfinite(out_train).all()), "non-finite values in dropout output"

    print("KERNEL_OK")
</pallas_src>

<mosaic_0001>
module attributes {stable_mosaic.version = 11 : i64} {
  func.func @_posenc_kernel(%arg0: i32, %arg1: i32, %arg2: memref<2x2x128xf32, #tpu.memory_space<vmem>>, %arg3: memref<2x128xf32, #tpu.memory_space<vmem>>, %arg4: memref<2x2x128xf32, #tpu.memory_space<vmem>>) attributes {dimension_semantics = [#tpu.dimension_semantics<parallel>, #tpu.dimension_semantics<parallel>], iteration_bounds = array<i64: 1, 1>, scalar_prefetch = 0 : i64, scratch_operands = 0 : i64, tpu.core_type = #tpu.core_type<tc>, window_params = [{transform_indices = @transform_0, window_bounds = array<i64: 2, 2, 128>}, {transform_indices = @transform_1, window_bounds = array<i64: 2, 128>}, {transform_indices = @transform_2, window_bounds = array<i64: 2, 2, 128>}]} {
    %c0 = arith.constant 0 : index
    %c0_0 = arith.constant 0 : index
    %c0_1 = arith.constant 0 : index
    %0 = vector.load %arg2[%c0, %c0_0, %c0_1] : memref<2x2x128xf32, #tpu.memory_space<vmem>>, vector<2x2x128xf32>
    %c0_2 = arith.constant 0 : index
    %c0_3 = arith.constant 0 : index
    %1 = vector.load %arg3[%c0_2, %c0_3] : memref<2x128xf32, #tpu.memory_space<vmem>>, vector<2x128xf32>
    %2 = vector.shape_cast %1 : vector<2x128xf32> to vector<1x2x128xf32>
    %3 = vector.broadcast %2 : vector<1x2x128xf32> to vector<2x2x128xf32>
    %4 = arith.addf %0, %3 : vector<2x2x128xf32>
    %c0_4 = arith.constant 0 : index
    %c0_5 = arith.constant 0 : index
    %c0_6 = arith.constant 0 : index
    %5 = vector.load %arg4[%c0_4, %c0_5, %c0_6] : memref<2x2x128xf32, #tpu.memory_space<vmem>>, vector<2x2x128xf32>
    tpu.vector_store %arg4[%c0_4, %c0_5, %c0_6], %4 {strides = array<i32>} : memref<2x2x128xf32, #tpu.memory_space<vmem>>, vector<2x2x128xf32>,
    return
  }
  func.func @transform_0(%arg0: i32, %arg1: i32) -> (i32, i32, i32) {
    %c0_i32 = arith.constant 0 : i32
    %c0_i32_0 = arith.constant 0 : i32
    return %arg1, %arg0, %c0_i32 : i32, i32, i32
  }
  func.func @transform_1(%arg0: i32, %arg1: i32) -> (i32, i32) {
    %c0_i32 = arith.constant 0 : i32
    %c0_i32_0 = arith.constant 0 : i32
    return %arg0, %c0_i32 : i32, i32
  }
  func.func @transform_2(%arg0: i32, %arg1: i32) -> (i32, i32, i32) {
    %c0_i32 = arith.constant 0 : i32
    %c0_i32_0 = arith.constant 0 : i32
    return %arg1, %arg0, %c0_i32 : i32, i32, i32
  }
}

</mosaic_0001>

<bundles_post_ra>
// kernel: tpu_custom_call.1
= control target key start
LH: loop header
LB: loop body
LE: loop exit
PB: predicated region body
PF: predicated region fallthrough
CT: control target
= control target key end

     0   :  { %7 = vsyncpa [#allocation3], 0  ;;  %s154_s0 = inlined_call_operand.hbm [shape: f32[2,2,128], index: 0, kind: input, shape index: {}]   ;;  %s155_s1 = inlined_call_operand.vmem [shape: f32[2,128], index: 1, kind: input, shape index: {}]   ;;  %s156_s2 = inlined_call_operand.hbm [shape: f32[2,2,128], index: 2, kind: output, shape index: {}]  }
   0x1   :  { %8 = vsyncpa [#allocation4], 0  ;;  %s102_s9 = smov [#allocation2]   ;;  %s54_s13 = scalar_lea.hbm %s154_s0, 64 }
   0x2   :  { %s14_s10 = sshll.u32 %s102_s9, 4  ;;  %p55_p0 = scmp.ne.s32.totalorder %s154_s0, %s54_s13  ;;  %s15_s10 = int_to_ptr.vmem [resolvable:$true] %s14_s10 }
   0x3   :  { %p58_p1 = scmp.lt.u32.totalorder %s54_s13, %s154_s0 }
   0x5   :  { %p60_p2 = pnand %p58_p1, %p55_p0 }
   0x7   :  { %63 = shalt.err (!%p60_p2)
}
   0x8   :  { %s64_s18 = scalar_lea.vmem %s15_s10, 64  ;;  %p69_p4 = scmp.lt.s32.totalorder %s15_s10, %s15_s10 }
   0x9   :  { %p65_p3 = scmp.ne.s32.totalorder %s15_s10, %s64_s18  ;;  %p70_p5 = scmp.lt.s32.totalorder %s64_s18, %s64_s18 }
   0xb   :  { %p71_p6 = por %p70_p5, %p69_p4 }
   0xd   :  { %p72_p7 = pnand %p71_p6, %p65_p3 }
   0xf   :  { %75 = shalt.err (!%p72_p7)
}
  0x10   :  { %s103_s19 = smov 32   ;;  %s104_s20 = smov 2  }
  0x11   :  { %20 = dma.hbm_to_vmem [thread:$0]  %s154_s0, 64, %s15_s10, [#allocation3], %s103_s19, %s103_s19, %s104_s20  }
  0x12   :  { %98 = dma.done.wait [#allocation3], 64  }
  0x13   :  { %99 = vsyncadd [#allocation3], 4294967232  ;;  %s105_s23 = smov [#allocation5]   ;;  %v26_v0 = vld [vmem:[#allocation2] sm:$0x3] }
  0x14   :  { %s38_s24 = sshll.u32 %s105_s23, 4  ;;  %v28_v1 = vld [vmem:[%s155_s1] sm:$0x3]  ;;  %v27_v2 = vld [vmem:[#allocation2 + $0x2] sm:$0x3]  ;;  %s39_s24 = int_to_ptr.vmem [resolvable:$true] %s38_s24 }
  0x15   :  { %v29_v3 = vadd.f32 %v28_v1, %v26_v0  ;;  %v30_v4 = vadd.f32 %v28_v1, %v27_v2  ;;  %s76_s27 = scalar_lea.vmem %s39_s24, 64  ;;  %p81_p9 = scmp.lt.s32.totalorder %s39_s24, %s39_s24 }
  0x16   :  { %p77_p8 = scmp.ne.s32.totalorder %s39_s24, %s76_s27  ;;  %p82_p10 = scmp.lt.s32.totalorder %s76_s27, %s76_s27 }
  0x17   :  { %31 = vst [vmem:[#allocation5] sm:$0x3] %v29_v3  ;;  %32 = vst [vmem:[#allocation5 + $0x2] sm:$0x3] %v30_v4 }
  0x18   :  { %p83_p11 = por %p82_p10, %p81_p9 }
  0x1a   :  { %p84_p12 = pnand %p83_p11, %p77_p8 }
  0x1c   :  { %87 = shalt.err (!%p84_p12)
}
  0x1d   :  { %s88_s29 = scalar_lea.hbm %s156_s2, 64 }
  0x1e   :  { %p89_p13 = scmp.ne.s32.totalorder %s156_s2, %s88_s29  ;;  %p92_p0 = scmp.lt.u32.totalorder %s88_s29, %s156_s2 }
  0x20   :  { %p94_p1 = pnand %p92_p0, %p89_p13 }
  0x22   :  { %97 = shalt.err (!%p94_p1)
}
  0x23   :  { %44 = dma.vmem_to_hbm [thread:$0]  %s39_s24, 64, %s156_s2, [#allocation4], %s103_s19, %s103_s19, %s104_s20  }
  0x24   :  { %100 = dma.done.wait [#allocation4], 64  }
  0x25   :  { %101 = vsyncadd [#allocation4], 4294967232 }
  0x26   :  { %48 = vsyncpa [#allocation3], 1 }
  0x27   :  { %49 = vsyncpa [#allocation4], 1 }

</bundles_post_ra>
